<compile_context>
chip_gen: v6e
topology: v6e:2x2x1
jax: 0.10.0
libtpu: 0.0.40
codegen_flags: <defaults>
</compile_context>

<pallas_src>
import functools

import jax
import jax.numpy as jnp
import numpy as np
from jax.experimental import pallas as pl
from jax.experimental.pallas import tpu as pltpu

# BT.601 full-range YUV->RGB matrix (applied to 0..255 data) and its offsets.
_M = (
    (1.0, 0.0, 1.402),
    (1.0, -0.344136, -0.714136),
    (1.0, 1.772, 0.0),
)
_C_OFF = (-1.402 * 128.0, (0.344136 + 0.714136) * 128.0, -1.772 * 128.0)
_ROWSUM = tuple(sum(row) for row in _M)


def _yuv_to_p(y, u, v):
    """Linear part of yuv2rgb: P = M @ [y, u, v]; the -128 offsets are folded into b."""
    p_r = y + _M[0][2] * v
    p_g = y + _M[1][1] * u + _M[1][2] * v
    p_b = y + _M[2][1] * u
    return p_r, p_g, p_b


# --------------------------------------------------------------------------------------
# Kernels
# --------------------------------------------------------------------------------------
def _reduce_kernel(x_ref, o_ref, min_acc, max_acc, *, rows_total, needs_mask):
    """Pass 1: per-batch min/max partials of [x, P_r, P_g, P_b].

    Per tile: only elementwise min/max into (4, S, 128) VMEM accumulators (VPU).
    Cross-sublane reduction happens once, in the last-tile epilogue.
    Output block (1, 8, 128): rows 0..3 = mins, rows 4..7 = maxs (per-lane partials).
    """
    t = pl.program_id(1)

    @pl.when(t == 0)
    def _init():
        min_acc[...] = jnp.full(min_acc.shape, jnp.inf, dtype=min_acc.dtype)
        max_acc[...] = jnp.full(max_acc.shape, -jnp.inf, dtype=max_acc.dtype)

    y = x_ref[0, 0].astype(jnp.float32)     # dense (S, 128) channel slabs
    u = x_ref[0, 1].astype(jnp.float32)
    v = x_ref[0, 2].astype(jnp.float32)
    p_r, p_g, p_b = _yuv_to_p(y, u, v)
    x_lo = jnp.minimum(jnp.minimum(y, u), v)
    x_hi = jnp.maximum(jnp.maximum(y, u), v)

    if needs_mask:  # static flag: only emitted when the last row-tile is partial
        rows = jax.lax.broadcasted_iota(jnp.int32, x_lo.shape, 0) + t * x_lo.shape[0]
        ok = rows < rows_total
        lo = lambda z: jnp.where(ok, z, jnp.inf)
        hi = lambda z: jnp.where(ok, z, -jnp.inf)
    else:
        lo = hi = lambda z: z

    min_acc[0] = jnp.minimum(min_acc[0], lo(x_lo))
    min_acc[1] = jnp.minimum(min_acc[1], lo(p_r))
    min_acc[2] = jnp.minimum(min_acc[2], lo(p_g))
    min_acc[3] = jnp.minimum(min_acc[3], lo(p_b))
    max_acc[0] = jnp.maximum(max_acc[0], hi(x_hi))
    max_acc[1] = jnp.maximum(max_acc[1], hi(p_r))
    max_acc[2] = jnp.maximum(max_acc[2], hi(p_g))
    max_acc[3] = jnp.maximum(max_acc[3], hi(p_b))

    @pl.when(t == pl.num_programs(1) - 1)
    def _finalize():
        mins = jnp.concatenate(
            [jnp.min(min_acc[i], axis=0, keepdims=True) for i in range(4)], axis=0)
        maxs = jnp.concatenate(
            [jnp.max(max_acc[i], axis=0, keepdims=True) for i in range(4)], axis=0)
        o_ref[0] = jnp.concatenate([mins, maxs], axis=0)


def _apply_kernel(coef_ref, x_ref, o_ref):
    """Pass 2: fused normalize + yuv2rgb + renormalize: out_ch = a * P_ch + b_ch."""
    a = coef_ref[0]          # SMEM scalars -> no VMEM broadcast buffers
    b_r = coef_ref[1]
    b_g = coef_ref[2]
    b_b = coef_ref[3]
    y = x_ref[0, 0].astype(jnp.float32)
    u = x_ref[0, 1].astype(jnp.float32)
    v = x_ref[0, 2].astype(jnp.float32)
    p_r, p_g, p_b = _yuv_to_p(y, u, v)
    o_ref[0, 0] = (a * p_r + b_r).astype(o_ref.dtype)
    o_ref[0, 1] = (a * p_g + b_g).astype(o_ref.dtype)
    o_ref[0, 2] = (a * p_b + b_b).astype(o_ref.dtype)


def _fused_kernel(x_ref, o_ref, *, normalize):
    """Single-pass path for inputs that fit in VMEM: 1 HBM read + 1 HBM write."""
    y = x_ref[:, 0].astype(jnp.float32)     # (N, R, 128)
    u = x_ref[:, 1].astype(jnp.float32)
    v = x_ref[:, 2].astype(jnp.float32)
    p_r, p_g, p_b = _yuv_to_p(y, u, v)

    if normalize:
        lo = lambda z: jnp.min(z.reshape(-1, 128))
        hi = lambda z: jnp.max(z.reshape(-1, 128))
        x_lo = lo(jnp.minimum(jnp.minimum(y, u), v))
        x_hi = hi(jnp.maximum(jnp.maximum(y, u), v))
        s1 = 255.0 / (x_hi - x_lo)                 # img_normalize(img, 0, 255)
        t1 = -s1 * x_lo
        d_r = t1 * _ROWSUM[0] + _C_OFF[0]          # rgb = s1 * P + d
        d_g = t1 * _ROWSUM[1] + _C_OFF[1]
        d_b = t1 * _ROWSUM[2] + _C_OFF[2]
        rgb_lo = jnp.minimum(jnp.minimum(s1 * lo(p_r) + d_r, s1 * lo(p_g) + d_g),
                             s1 * lo(p_b) + d_b)
        rgb_hi = jnp.maximum(jnp.maximum(s1 * hi(p_r) + d_r, s1 * hi(p_g) + d_g),
                             s1 * hi(p_b) + d_b)
        s2 = (x_hi - x_lo) / (rgb_hi - rgb_lo)     # img_normalize(rgb, minn, maxx)
        t2 = x_lo - s2 * rgb_lo
        a = s1 * s2
        b_r = s2 * d_r + t2
        b_g = s2 * d_g + t2
        b_b = s2 * d_b + t2
    else:
        a = 1.0
        b_r, b_g, b_b = _C_OFF

    o_ref[:, 0] = (a * p_r + b_r).astype(o_ref.dtype)
    o_ref[:, 1] = (a * p_g + b_g).astype(o_ref.dtype)
    o_ref[:, 2] = (a * p_b + b_b).astype(o_ref.dtype)


# --------------------------------------------------------------------------------------
# Wrapper
# --------------------------------------------------------------------------------------
def _vmem_capacity_bytes() -> int:
    """Physical VMEM of this TPU generation (fallback 64 MiB = v7x, the smallest)."""
    try:
        cap = int(pltpu.get_tpu_info().vmem_capacity_bytes)
        if cap > 0:
            return cap
    except Exception:
        pass
    return 64 * 1024 * 1024


def _pick_rows(rows, in_itemsize, out_itemsize, vmem_cap, max_rows=None):
    """Rows (of 128 lanes) per tile: as large as comfortably fits VMEM, multiple of 8."""
    # Pass-2 working set per grid step: double-buffered 3-channel input + output slabs.
    per_row = 2 * 3 * 128 * (in_itemsize + out_itemsize)
    budget = min(vmem_cap // 4, 16 * 1024 * 1024)
    s = min(budget // per_row, 2048)       # cap at 256K elements / channel / tile
    if max_rows is not None:
        s = min(s, max_rows)
    s = max(8, (int(s) // 8) * 8)
    return rows if s >= rows else s


def _fold_coefficients(mins, maxs):
    """Fold normalize -> yuv2rgb -> renormalize into out_ch = a * P_ch + b_ch."""
    rowsum = jnp.asarray(_ROWSUM, dtype=jnp.float32)
    c_off = jnp.asarray(_C_OFF, dtype=jnp.float32)
    x_lo, x_hi = mins[0], maxs[0]
    p_lo, p_hi = mins[1:4], maxs[1:4]
    s1 = 255.0 / (x_hi - x_lo)             # img_normalize(img, 0, 255)
    t1 = -s1 * x_lo
    d = t1 * rowsum + c_off                # rgb = s1 * P + d
    rgb_lo = jnp.min(s1 * p_lo + d)        # valid because s1 > 0
    rgb_hi = jnp.max(s1 * p_hi + d)
    s2 = (x_hi - x_lo) / (rgb_hi - rgb_lo)  # img_normalize(rgb, minn, maxx)
    t2 = x_lo - s2 * rgb_lo
    a = s1 * s2
    b = s2 * d + t2
    return jnp.concatenate([jnp.reshape(a, (1,)), b]).astype(jnp.float32)


def yuv2rgb_layer_forward(img, normalize=True, *, force_tiled=False,
                          max_rows_per_tile=None):
    """Equivalent of YUV2RGBLayer(normalize=...).forward(img). img: (N, 3, H, W)."""
    N, C, H, W = img.shape
    assert C == 3, "YUV2RGBLayer expects 3 channels (Y, U, V)"
    P = H * W
    P_pad = -(-P // 128) * 128
    out_dtype = img.dtype

    x3 = img.reshape(N, C, P)                       # contiguous, free reshape
    if P_pad != P:
        # Edge-replicate so padded lanes never perturb the global min/max.
        x3 = jnp.pad(x3, ((0, 0), (0, 0), (0, P_pad - P)), mode="edge")
    R = P_pad // 128
    x4 = x3.reshape(N, C, R, 128)                   # dense (sublane, lane) channel slabs

    vmem_cap = _vmem_capacity_bytes()
    vmem_limit = int(min(vmem_cap, 128 * 1024 * 1024) * 3 // 4)

    # ---- Fully VMEM-resident single-pass path (1 HBM read + 1 HBM write) ----
    f32_plane = N * R * 128 * 4
    fused_est = (x4.size * x4.dtype.itemsize
                 + x4.size * jnp.dtype(out_dtype).itemsize
                 + 8 * f32_plane)                   # conservative temp estimate
    if (not force_tiled) and fused_est <= vmem_cap // 3:
        out4 = pl.pallas_call(
            functools.partial(_fused_kernel, normalize=normalize),
            out_shape=jax.ShapeDtypeStruct(x4.shape, out_dtype),
            compiler_params=pltpu.CompilerParams(vmem_limit_bytes=vmem_limit),
        )(x4)
        return out4.reshape(N, C, P_pad)[..., :P].reshape(N, C, H, W)

    # ---- Tiled two-pass path ----
    S = _pick_rows(R, x4.dtype.itemsize, jnp.dtype(out_dtype).itemsize,
                   vmem_cap, max_rows_per_tile)
    T = pl.cdiv(R, S)
    needs_mask = (R % S) != 0
    grid = (N, T)
    x_spec = pl.BlockSpec((1, C, S, 128), lambda n, t: (n, 0, t, 0))

    if normalize:
        stats = pl.pallas_call(
            functools.partial(_reduce_kernel, rows_total=R, needs_mask=needs_mask),
            out_shape=jax.ShapeDtypeStruct((N, 8, 128), jnp.float32),
            grid=grid,
            in_specs=[x_spec],
            out_specs=pl.BlockSpec((1, 8, 128), lambda n, t: (n, 0, 0)),
            scratch_shapes=[pltpu.VMEM((4, S, 128), jnp.float32),
                            pltpu.VMEM((4, S, 128), jnp.float32)],
            compiler_params=pltpu.CompilerParams(
                dimension_semantics=("parallel", "arbitrary"),
                vmem_limit_bytes=vmem_limit),
        )(x4)
        mins = jnp.min(stats[:, 0:4, :], axis=(0, 2))   # [x, P_r, P_g, P_b] global mins
        maxs = jnp.max(stats[:, 4:8, :], axis=(0, 2))
        coef = _fold_coefficients(mins, maxs)
    else:
        coef = jnp.asarray([1.0, _C_OFF[0], _C_OFF[1], _C_OFF[2]], dtype=jnp.float32)

    out4 = pl.pallas_call(
        _apply_kernel,
        out_shape=jax.ShapeDtypeStruct(x4.shape, out_dtype),
        grid=grid,
        in_specs=[pl.BlockSpec(memory_space=pltpu.MemorySpace.SMEM), x_spec],
        out_specs=pl.BlockSpec((1, C, S, 128), lambda n, t: (n, 0, t, 0)),
        compiler_params=pltpu.CompilerParams(
            dimension_semantics=("parallel", "parallel"),
            vmem_limit_bytes=vmem_limit),
    )(coef, x4)
    return out4.reshape(N, C, P_pad)[..., :P].reshape(N, C, H, W)


# --------------------------------------------------------------------------------------
# Pure-JAX reference (matches the assumed PyTorch forward)
# --------------------------------------------------------------------------------------
def _reference(img, normalize=True):
    x = img.astype(jnp.float32)
    minn = x.min()
    maxx = x.max()
    xn = (x - minn) / (maxx - minn) * 255.0 if normalize else x
    y, u, v = xn[:, 0], xn[:, 1], xn[:, 2]
    r = y + 1.402 * (v - 128.0)
    g = y - 0.344136 * (u - 128.0) - 0.714136 * (v - 128.0)
    b = y + 1.772 * (u - 128.0)
    rgb = jnp.stack([r, g, b], axis=1)
    if normalize:
        rgb = (rgb - rgb.min()) / (rgb.max() - rgb.min()) * (maxx - minn) + minn
    return rgb.astype(img.dtype)


if __name__ == "__main__":
    key = jax.random.PRNGKey(0)
    k1, k2 = jax.random.split(key)

    fwd = jax.jit(yuv2rgb_layer_forward,
                  static_argnames=("normalize", "force_tiled", "max_rows_per_tile"))

    # 1) Small input -> fused single-pass path (whole array resident in VMEM).
    x = jax.random.normal(k1, (2, 3, 16, 16), dtype=jnp.float32)
    out = jax.block_until_ready(fwd(x))
    assert out.shape == x.shape and out.dtype == x.dtype
    np.testing.assert_allclose(np.asarray(out), np.asarray(_reference(x)),
                               rtol=5e-4, atol=5e-4)

    # 2) Same input through the tiled two-pass path.
    out_t = jax.block_until_ready(fwd(x, force_tiled=True))
    np.testing.assert_allclose(np.asarray(out_t), np.asarray(_reference(x)),
                               rtol=5e-4, atol=5e-4)

    # 3) Non-128-multiple spatial size + small tiles -> exercises lane edge-padding,
    #    the cdiv grid with a partial last row-tile and the in-kernel tail mask.
    x_odd = jax.random.normal(k2, (1, 3, 36, 45), dtype=jnp.float32)
    out_o = jax.block_until_ready(fwd(x_odd, force_tiled=True, max_rows_per_tile=8))
    np.testing.assert_allclose(np.asarray(out_o), np.asarray(_reference(x_odd)),
                               rtol=5e-4, atol=5e-4)

    # 4) normalize=False branch.
    out_n = jax.block_until_ready(fwd(x, normalize=False))
    np.testing.assert_allclose(np.asarray(out_n),
                               np.asarray(_reference(x, normalize=False)),
                               rtol=5e-4, atol=5e-4)

    print("KERNEL_OK")
</pallas_src>

<mosaic_0001>
module attributes {stable_mosaic.version = 11 : i64} {
  func.func @_fused_kernel(%arg0: memref<2x3x2x128xf32, #tpu.memory_space<vmem>>, %arg1: memref<2x3x2x128xf32, #tpu.memory_space<vmem>>) attributes {dimension_semantics = [], scalar_prefetch = 0 : i64, scratch_operands = 0 : i64, tpu.core_type = #tpu.core_type<tc>} {
    %c0 = arith.constant 0 : index
    %c0_0 = arith.constant 0 : index
    %c0_1 = arith.constant 0 : index
    %c0_2 = arith.constant 0 : index
    %0 = vector.load %arg0[%c0, %c0_0, %c0_1, %c0_2] : memref<2x3x2x128xf32, #tpu.memory_space<vmem>>, vector<2x1x2x128xf32>
    %1 = vector.shape_cast %0 : vector<2x1x2x128xf32> to vector<2x2x128xf32>
    %c0_3 = arith.constant 0 : index
    %c1 = arith.constant 1 : index
    %c0_4 = arith.constant 0 : index
    %c0_5 = arith.constant 0 : index
    %2 = vector.load %arg0[%c0_3, %c1, %c0_4, %c0_5] : memref<2x3x2x128xf32, #tpu.memory_space<vmem>>, vector<2x1x2x128xf32>
    %3 = vector.shape_cast %2 : vector<2x1x2x128xf32> to vector<2x2x128xf32>
    %c0_6 = arith.constant 0 : index
    %c2 = arith.constant 2 : index
    %c0_7 = arith.constant 0 : index
    %c0_8 = arith.constant 0 : index
    %4 = vector.load %arg0[%c0_6, %c2, %c0_7, %c0_8] : memref<2x3x2x128xf32, #tpu.memory_space<vmem>>, vector<2x1x2x128xf32>
    %5 = vector.shape_cast %4 : vector<2x1x2x128xf32> to vector<2x2x128xf32>
    %cst = arith.constant 1.402000e+00 : f32
    %6 = vector.broadcast %cst : f32 to vector<2x2x128xf32>
    %7 = arith.mulf %6, %5 : vector<2x2x128xf32>
    %8 = arith.addf %1, %7 : vector<2x2x128xf32>
    %cst_9 = arith.constant -3.441360e-01 : f32
    %9 = vector.broadcast %cst_9 : f32 to vector<2x2x128xf32>
    %10 = arith.mulf %9, %3 : vector<2x2x128xf32>
    %11 = arith.addf %1, %10 : vector<2x2x128xf32>
    %cst_10 = arith.constant -7.141360e-01 : f32
    %12 = vector.broadcast %cst_10 : f32 to vector<2x2x128xf32>
    %13 = arith.mulf %12, %5 : vector<2x2x128xf32>
    %14 = arith.addf %11, %13 : vector<2x2x128xf32>
    %cst_11 = arith.constant 1.772000e+00 : f32
    %15 = vector.broadcast %cst_11 : f32 to vector<2x2x128xf32>
    %16 = arith.mulf %15, %3 : vector<2x2x128xf32>
    %17 = arith.addf %1, %16 : vector<2x2x128xf32>
    %18 = arith.minimumf %1, %3 : vector<2x2x128xf32>
    %19 = arith.minimumf %18, %5 : vector<2x2x128xf32>
    %20 = vector.shape_cast %19 : vector<2x2x128xf32> to vector<4x128xf32>
    %21 = vector.shape_cast %20 : vector<4x128xf32> to vector<1x4x128xf32>
    %cst_12 = arith.constant dense<0x7F800000> : vector<1xf32>
    %22 = vector.multi_reduction <minimumf>, %21, %cst_12 [1, 2] : vector<1x4x128xf32> to vector<1xf32>
    %23 = vector.shape_cast %22 : vector<1xf32> to vector<1x1x1xf32>
    %24 = vector.extract %23[0, 0, 0] : f32 from vector<1x1x1xf32>
    %25 = arith.maximumf %1, %3 : vector<2x2x128xf32>
    %26 = arith.maximumf %25, %5 : vector<2x2x128xf32>
    %27 = vector.shape_cast %26 : vector<2x2x128xf32> to vector<4x128xf32>
    %28 = vector.shape_cast %27 : vector<4x128xf32> to vector<1x4x128xf32>
    %cst_13 = arith.constant dense<0xFF800000> : vector<1xf32>
    %29 = vector.multi_reduction <maximumf>, %28, %cst_13 [1, 2] : vector<1x4x128xf32> to vector<1xf32>
    %30 = vector.shape_cast %29 : vector<1xf32> to vector<1x1x1xf32>
    %31 = vector.extract %30[0, 0, 0] : f32 from vector<1x1x1xf32>
    %32 = arith.subf %31, %24 : f32
    %cst_14 = arith.constant 2.550000e+02 : f32
    %33 = arith.divf %cst_14, %32 : f32
    %cst_15 = arith.constant 0.000000e+00 : f32
    %34 = arith.subf %cst_15, %33 : f32
    %35 = arith.mulf %34, %24 : f32
    %cst_16 = arith.constant 2.402000e+00 : f32
    %36 = arith.mulf %35, %cst_16 : f32
    %cst_17 = arith.constant -1.794560e+02 : f32
    %37 = arith.addf %36, %cst_17 : f32
    %cst_18 = arith.constant -5.827200e-02 : f32
    %38 = arith.mulf %35, %cst_18 : f32
    %cst_19 = arith.constant 135.458817 : f32
    %39 = arith.addf %38, %cst_19 : f32
    %cst_20 = arith.constant 2.772000e+00 : f32
    %40 = arith.mulf %35, %cst_20 : f32
    %cst_21 = arith.constant -2.268160e+02 : f32
    %41 = arith.addf %40, %cst_21 : f32
    %42 = vector.shape_cast %8 : vector<2x2x128xf32> to vector<4x128xf32>
    %43 = vector.shape_cast %42 : vector<4x128xf32> to vector<1x4x128xf32>
    %cst_22 = arith.constant dense<0x7F800000> : vector<1xf32>
    %44 = vector.multi_reduction <minimumf>, %43, %cst_22 [1, 2] : vector<1x4x128xf32> to vector<1xf32>
    %45 = vector.shape_cast %44 : vector<1xf32> to vector<1x1x1xf32>
    %46 = vector.extract %45[0, 0, 0] : f32 from vector<1x1x1xf32>
    %47 = arith.mulf %33, %46 : f32
    %48 = arith.addf %47, %37 : f32
    %49 = vector.shape_cast %14 : vector<2x2x128xf32> to vector<4x128xf32>
    %50 = vector.shape_cast %49 : vector<4x128xf32> to vector<1x4x128xf32>
    %cst_23 = arith.constant dense<0x7F800000> : vector<1xf32>
    %51 = vector.multi_reduction <minimumf>, %50, %cst_23 [1, 2] : vector<1x4x128xf32> to vector<1xf32>
    %52 = vector.shape_cast %51 : vector<1xf32> to vector<1x1x1xf32>
    %53 = vector.extract %52[0, 0, 0] : f32 from vector<1x1x1xf32>
    %54 = arith.mulf %33, %53 : f32
    %55 = arith.addf %54, %39 : f32
    %56 = arith.minimumf %48, %55 : f32
    %57 = vector.shape_cast %17 : vector<2x2x128xf32> to vector<4x128xf32>
    %58 = vector.shape_cast %57 : vector<4x128xf32> to vector<1x4x128xf32>
    %cst_24 = arith.constant dense<0x7F800000> : vector<1xf32>
    %59 = vector.multi_reduction <minimumf>, %58, %cst_24 [1, 2] : vector<1x4x128xf32> to vector<1xf32>
    %60 = vector.shape_cast %59 : vector<1xf32> to vector<1x1x1xf32>
    %61 = vector.extract %60[0, 0, 0] : f32 from vector<1x1x1xf32>
    %62 = arith.mulf %33, %61 : f32
    %63 = arith.addf %62, %41 : f32
    %64 = arith.minimumf %56, %63 : f32
    %65 = vector.shape_cast %8 : vector<2x2x128xf32> to vector<4x128xf32>
    %66 = vector.shape_cast %65 : vector<4x128xf32> to vector<1x4x128xf32>
    %cst_25 = arith.constant dense<0xFF800000> : vector<1xf32>
    %67 = vector.multi_reduction <maximumf>, %66, %cst_25 [1, 2] : vector<1x4x128xf32> to vector<1xf32>
    %68 = vector.shape_cast %67 : vector<1xf32> to vector<1x1x1xf32>
    %69 = vector.extract %68[0, 0, 0] : f32 from vector<1x1x1xf32>
    %70 = arith.mulf %33, %69 : f32
    %71 = arith.addf %70, %37 : f32
    %72 = vector.shape_cast %14 : vector<2x2x128xf32> to vector<4x128xf32>
    %73 = vector.shape_cast %72 : vector<4x128xf32> to vector<1x4x128xf32>
    %cst_26 = arith.constant dense<0xFF800000> : vector<1xf32>
    %74 = vector.multi_reduction <maximumf>, %73, %cst_26 [1, 2] : vector<1x4x128xf32> to vector<1xf32>
    %75 = vector.shape_cast %74 : vector<1xf32> to vector<1x1x1xf32>
    %76 = vector.extract %75[0, 0, 0] : f32 from vector<1x1x1xf32>
    %77 = arith.mulf %33, %76 : f32
    %78 = arith.addf %77, %39 : f32
    %79 = arith.maximumf %71, %78 : f32
    %80 = vector.shape_cast %17 : vector<2x2x128xf32> to vector<4x128xf32>
    %81 = vector.shape_cast %80 : vector<4x128xf32> to vector<1x4x128xf32>
    %cst_27 = arith.constant dense<0xFF800000> : vector<1xf32>
    %82 = vector.multi_reduction <maximumf>, %81, %cst_27 [1, 2] : vector<1x4x128xf32> to vector<1xf32>
    %83 = vector.shape_cast %82 : vector<1xf32> to vector<1x1x1xf32>
    %84 = vector.extract %83[0, 0, 0] : f32 from vector<1x1x1xf32>
    %85 = arith.mulf %33, %84 : f32
    %86 = arith.addf %85, %41 : f32
    %87 = arith.maximumf %79, %86 : f32
    %88 = arith.subf %31, %24 : f32
    %89 = arith.subf %87, %64 : f32
    %90 = arith.divf %88, %89 : f32
    %91 = arith.mulf %90, %64 : f32
    %92 = arith.subf %24, %91 : f32
    %93 = arith.mulf %33, %90 : f32
    %94 = arith.mulf %90, %37 : f32
    %95 = arith.addf %94, %92 : f32
    %96 = arith.mulf %90, %39 : f32
    %97 = arith.addf %96, %92 : f32
    %98 = arith.mulf %90, %41 : f32
    %99 = arith.addf %98, %92 : f32
    %100 = vector.broadcast %93 : f32 to vector<2x2x128xf32>
    %101 = arith.mulf %100, %8 : vector<2x2x128xf32>
    %102 = vector.broadcast %95 : f32 to vector<2x2x128xf32>
    %103 = arith.addf %101, %102 : vector<2x2x128xf32>
    %c0_28 = arith.constant 0 : index
    %c0_29 = arith.constant 0 : index
    %c0_30 = arith.constant 0 : index
    %c0_31 = arith.constant 0 : index
    %104 = vector.load %arg1[%c0_28, %c0_29, %c0_30, %c0_31] : memref<2x3x2x128xf32, #tpu.memory_space<vmem>>, vector<2x1x2x128xf32>
    %105 = vector.shape_cast %104 : vector<2x1x2x128xf32> to vector<2x2x128xf32>
    %106 = vector.shape_cast %103 : vector<2x2x128xf32> to vector<2x1x2x128xf32>
    tpu.vector_store %arg1[%c0_28, %c0_29, %c0_30, %c0_31], %106 {strides = array<i32>} : memref<2x3x2x128xf32, #tpu.memory_space<vmem>>, vector<2x1x2x128xf32>,
    %107 = vector.broadcast %93 : f32 to vector<2x2x128xf32>
    %108 = arith.mulf %107, %14 : vector<2x2x128xf32>
    %109 = vector.broadcast %97 : f32 to vector<2x2x128xf32>
    %110 = arith.addf %108, %109 : vector<2x2x128xf32>
    %c0_32 = arith.constant 0 : index
    %c1_33 = arith.constant 1 : index
    %c0_34 = arith.constant 0 : index
    %c0_35 = arith.constant 0 : index
    %111 = vector.load %arg1[%c0_32, %c1_33, %c0_34, %c0_35] : memref<2x3x2x128xf32, #tpu.memory_space<vmem>>, vector<2x1x2x128xf32>
    %112 = vector.shape_cast %111 : vector<2x1x2x128xf32> to vector<2x2x128xf32>
    %113 = vector.shape_cast %110 : vector<2x2x128xf32> to vector<2x1x2x128xf32>
    tpu.vector_store %arg1[%c0_32, %c1_33, %c0_34, %c0_35], %113 {strides = array<i32>} : memref<2x3x2x128xf32, #tpu.memory_space<vmem>>, vector<2x1x2x128xf32>,
    %114 = vector.broadcast %93 : f32 to vector<2x2x128xf32>
    %115 = arith.mulf %114, %17 : vector<2x2x128xf32>
    %116 = vector.broadcast %99 : f32 to vector<2x2x128xf32>
    %117 = arith.addf %115, %116 : vector<2x2x128xf32>
    %c0_36 = arith.constant 0 : index
    %c2_37 = arith.constant 2 : index
    %c0_38 = arith.constant 0 : index
    %c0_39 = arith.constant 0 : index
    %118 = vector.load %arg1[%c0_36, %c2_37, %c0_38, %c0_39] : memref<2x3x2x128xf32, #tpu.memory_space<vmem>>, vector<2x1x2x128xf32>
    %119 = vector.shape_cast %118 : vector<2x1x2x128xf32> to vector<2x2x128xf32>
    %120 = vector.shape_cast %117 : vector<2x2x128xf32> to vector<2x1x2x128xf32>
    tpu.vector_store %arg1[%c0_36, %c2_37, %c0_38, %c0_39], %120 {strides = array<i32>} : memref<2x3x2x128xf32, #tpu.memory_space<vmem>>, vector<2x1x2x128xf32>,
    return
  }
}

</mosaic_0001>

<bundles_post_ra>
// kernel: yuv2rgb_layer_forward.1
= control target key start
LH: loop header
LB: loop body
LE: loop exit
PB: predicated region body
PF: predicated region fallthrough
CT: control target
= control target key end

     0   :  { %v42_v0 = vlaneseq  ;;  %vm47_vm0 = vcmask 1043456   ;;  %v280_v4 = vmov 1983009808   ;;  %s393_s0 = inlined_call_operand.vmem [shape: f32[2,3,2,128], index: 0, kind: input, shape index: {}]   ;;  %s394_s1 = inlined_call_operand.vmem [shape: f32[2,3,2,128], index: 1, kind: output, shape index: {}]  }
   0x1   :  { %v8_v1 = vld [vmem:[%s393_s0] sm:$0x3]  ;;  %v9_v2 = vld [vmem:[%s393_s0 + $0x6] sm:$0x3]  ;;  %v247_v3 = vld [vmem:[%s393_s0 + $0x2] sm:$0x3]  ;;  %v40_v5 = vunpack.c.l.s4 %v280_v4 }
   0x2   :  { %v248_v6 = vld [vmem:[%s393_s0 + $0x8] sm:$0x3]  ;;  %v249_v7 = vld [vmem:[%s393_s0 + $0x4] sm:$0x3]  ;;  %v250_v8 = vld [vmem:[%s393_s0 + $0xa] sm:$0x3]  ;;  %v32_v9 = vmin.f32 %v8_v1, %v247_v3  ;;  %v58_v10 = vmax.f32 %v8_v1, %v247_v3 }
   0x3   :  { %v33_v11 = vmin.f32 %v9_v2, %v248_v6  ;;  %v41_v12 = vunpack.c.0.s8 %v40_v5  ;;  %v43_v13 = vshrl.u32 %v42_v0, 7  ;;  %v59_v14 = vmax.f32 %v9_v2, %v248_v6 }
   0x4   :  { %v34_v15 = vmin.f32 %v32_v9, %v249_v7  ;;  %v60_v16 = vmax.f32 %v58_v10, %v249_v7  ;;  %v16_v17 = vmul.f32 1.402, %v249_v7  ;;  %v17_v18 = vmul.f32 1.402, %v250_v8 }
   0x5   :  { %v35_v19 = vmin.f32 %v33_v11, %v250_v8  ;;  %v44_v20 = vsub.s32 %v41_v12, %v43_v13  ;;  %v61_v21 = vmax.f32 %v59_v14, %v250_v8  ;;  %v28_v22 = vmul.f32 1.772, %v247_v3 }
   0x6   :  { %v309_v23 = vadd.f32 %v16_v17, %v8_v1  ;;  %v311_v24 = vadd.f32 %v17_v18, %v9_v2  ;;  %v29_v25 = vmul.f32 1.772, %v248_v6  ;;  %v20_v26 = vmul.f32 -0.344136, %v247_v3 }
   0x7   :  { %v38_v27 = vcombine.low %v34_v15, %v35_v19  ;;  %v64_v28 = vcombine.low %v60_v16, %v61_v21  ;;  %v313_v29 = vadd.f32 %v28_v22, %v8_v1  ;;  %v21_v30 = vmul.f32 -0.344136, %v248_v6 }
   0x8   :  { %v98_v31 = vcombine.low %v309_v23, %v311_v24  ;;  %v317_v32 = vadd.f32 %v29_v25, %v9_v2  ;;  %v22_v33 = vadd.f32 %v20_v26, %v8_v1  ;;  %v24_v34 = vmul.f32 -0.714136, %v249_v7 }
   0x9   :  { %v45_v35 = vrot.slane %v38_v27, %v44_v20  ;;  %v71_v36 = vrot.slane %v64_v28, %v44_v20  ;;  %v23_v37 = vadd.f32 %v21_v30, %v9_v2  ;;  %v25_v38 = vmul.f32 -0.714136, %v250_v8 }
   0xa   :  { %v105_v39 = vrot.slane %v98_v31, %v44_v20  ;;  %v145_v40 = vcombine.low %v313_v29, %v317_v32  ;;  %v321_v41 = vadd.f32 %v24_v34, %v22_v33 }
   0xb   :  { %v48_v42 = vsel %vm47_vm0, %v45_v35, inf  ;;  %v324_v43 = vadd.f32 %v25_v38, %v23_v37  ;;  %v73_v45 = vsel %vm47_vm0, %v71_v36, -inf }
   0xc   :  { %49 = vmin.xlane.f32.xlu0 %v48_v42  ;;  %v107_v44 = vsel %vm47_vm0, %v105_v39, inf  ;;  %v152_v46 = vrot.slane %v145_v40, %v44_v20  ;;  %v167_v48 = vsel %vm47_vm0, %v105_v39, -inf }
   0xd   :  { %108 = vmin.xlane.f32.xlu1 %v107_v44  ;;  %v121_v47 = vcombine.low %v321_v41, %v324_v43 }
   0xe   :  { %v154_v50 = vsel %vm47_vm0, %v152_v46, inf  ;;  %v192_v53 = vsel %vm47_vm0, %v152_v46, -inf }
   0xf   :  { %v128_v49 = vrot.slane %v121_v47, %v44_v20 }
  0x10   :  { %74 = vmax.xlane.f32.xlu0 %v73_v45 }
  0x11   :  { %168 = vmax.xlane.f32.xlu1 %v167_v48  ;;  %v130_v51 = vsel %vm47_vm0, %v128_v49, inf  ;;  %v179_v52 = vsel %vm47_vm0, %v128_v49, -inf }
  0x14   :  { %155 = vmin.xlane.f32.xlu0 %v154_v50 }
  0x15   :  { %131 = vmin.xlane.f32.xlu1 %v130_v51 }
  0x18   :  { %180 = vmax.xlane.f32.xlu0 %v179_v52 }
  0x19   :  { %193 = vmax.xlane.f32.xlu1 %v192_v53 }
  0x95   :  { %v50_v54 = vpop.xlane.xlu0 %49 }
  0x96   :  { %v51_v55 = vrot.slane %v50_v54, 4  ;;  %v109_v4 = vpop.xlane.xlu1 %108 }
  0x97   :  { %v110_v10 = vrot.slane %v109_v4, 4 }
  0x98   :  { %v52_v56 = vmin.f32 %v50_v54, %v51_v55 }
  0x99   :  { %v75_v57 = vpop.xlane.xlu0 %74  ;;  %v111_v17 = vmin.f32 %v109_v4, %v110_v10 }
  0x9a   :  { %v53_v58 = vrot.slane %v52_v56, 2  ;;  %v76_v59 = vrot.slane %v75_v57, 4  ;;  %v169_v5 = vpop.xlane.xlu1 %168 }
  0x9b   :  { %v170_v14 = vrot.slane %v169_v5, 4  ;;  %v112_v26 = vrot.slane %v111_v17, 2 }
  0x9c   :  { %v77_v60 = vmax.f32 %v75_v57, %v76_v59  ;;  %v54_v61 = vmin.f32 %v52_v56, %v53_v58 }
  0x9d   :  { %v156_v6 = vpop.xlane.xlu0 %155  ;;  %v171_v21 = vmax.f32 %v169_v5, %v170_v14  ;;  %v113_v34 = vmin.f32 %v111_v17, %v112_v26 }
  0x9e   :  { %v78_v62 = vrot.slane %v77_v60, 2  ;;  %v55_v63 = vrot.slane %v54_v61, 1  ;;  %v132_v7 = vpop.xlane.xlu1 %131  ;;  %v157_v12 = vrot.slane %v156_v6, 4 }
  0x9f   :  { %v133_v8 = vrot.slane %v132_v7, 4  ;;  %v172_v30 = vrot.slane %v171_v21, 2  ;;  %v114_v40 = vrot.slane %v113_v34, 1 }
  0xa0   :  { %v56_v0 = vmin.f32 %v54_v61, %v55_v63  ;;  %v79_v1 = vmax.f32 %v77_v60, %v78_v62  ;;  %v158_v19 = vmin.f32 %v156_v6, %v157_v12 }
  0xa1   :  { %v181_v9 = vpop.xlane.xlu0 %180  ;;  %v134_v15 = vmin.f32 %v132_v7, %v133_v8  ;;  %v173_v39 = vmax.f32 %v171_v21, %v172_v30  ;;  %v115_v49 = vmin.f32 %v113_v34, %v114_v40 }
  0xa2   :  { %255 = vpush %v56_v0  ;;  %v80_v2 = vrot.slane %v79_v1, 1  ;;  %v194_v11 = vpop.xlane.xlu1 %193  ;;  %v182_v13 = vrot.slane %v181_v9, 4  ;;  %v159_v27 = vrot.slane %v158_v19, 2 }
  0xa3   :  { %v195_v16 = vrot.slane %v194_v11, 4  ;;  %v135_v22 = vrot.slane %v134_v15, 2  ;;  %v174_v46 = vrot.slane %v173_v39, 1 }
  0xa4   :  { %v81_v3 = vmax.f32 %v79_v1, %v80_v2  ;;  %v183_v20 = vmax.f32 %v181_v9, %v182_v13  ;;  %v160_v36 = vmin.f32 %v158_v19, %v159_v27 }
  0xa5   :  { %v196_v25 = vmax.f32 %v194_v11, %v195_v16  ;;  %v136_v33 = vmin.f32 %v134_v15, %v135_v22  ;;  %v175_v52 = vmax.f32 %v173_v39, %v174_v46 }
  0xa6   :  { %257 = vpush %v81_v3  ;;  %v184_v28 = vrot.slane %v183_v20, 2  ;;  %v161_v42 = vrot.slane %v160_v36, 1 }
  0xa7   :  { %v197_v31 = vrot.slane %v196_v25, 2  ;;  %v137_v38 = vrot.slane %v136_v33, 1 }
  0xa8   :  { %v185_v35 = vmax.f32 %v183_v20, %v184_v28  ;;  %v162_v50 = vmin.f32 %v160_v36, %v161_v42 }
  0xa9   :  { %v198_v37 = vmax.f32 %v196_v25, %v197_v31  ;;  %v138_v45 = vmin.f32 %v136_v33, %v137_v38 }
  0xaa   :  { %v186_v44 = vrot.slane %v185_v35, 1 }
  0xab   :  { %v199_v47 = vrot.slane %v198_v37, 1 }
  0xac   :  { %v187_v51 = vmax.f32 %v185_v35, %v186_v44 }
  0xad   :  { %v200_v53 = vmax.f32 %v198_v37, %v199_v47 }
  0xd3   :  { %s335_s0 = spop %255 }
  0xd7   :  { %s258_s18 = spop %257 }
  0xd8   :  { %s338_s19 = ssub.f32 %s258_s18, %s335_s0 }
  0xda   :  { %v84_v18 = vstv %s338_s19 }
  0xdb   :  { %276 = vrcp.f32 %v84_v18 }
  0xe8   :  { %v277_v48 = vpop.eup %276 }
  0xe9   :  { %259 = vpush %v277_v48 }
  0xea   :  { %261 = vpush %v115_v49 }
  0xeb   :  { %263 = vpush %v138_v45 }
  0xec   :  { %265 = vpush %v162_v50 }
  0xed   :  { %267 = vpush %v175_v52 }
  0xee   :  { %269 = vpush %v187_v51 }
  0xef   :  { %271 = vpush %v200_v53 }
 0x11a   :  { %s260_s20 = spop %259 }
 0x11b   :  { %s341_s21 = smul.f32 255.0, %s260_s20  ;;  %s262_s22 = spop %261 }
 0x11c   :  { %s264_s24 = spop %263 }
 0x11d   :  { %s88_s23 = ssub.f32 0.0, %s341_s21  ;;  %s117_s25 = smul.f32 %s262_s22, %s341_s21 }
 0x11e   :  { %s266_s27 = spop %265  ;;  %s140_s28 = smul.f32 %s264_s24, %s341_s21 }
 0x11f   :  { %s89_s26 = smul.f32 %s335_s0, %s88_s23  ;;  %s268_s30 = spop %267 }
 0x120   :  { %s270_s3 = spop %269  ;;  %s164_s7 = smul.f32 %s266_s27, %s341_s21 }
 0x121   :  { %s90_s29 = smul.f32 2.402, %s89_s26  ;;  %s272_s9 = spop %271 }
 0x122   :  { %s92_s2 = smul.f32 -0.058272, %s89_s26 }
 0x123   :  { %s347_s4 = sadd.f32 -179.456, %s90_s29  ;;  %s94_s5 = smul.f32 2.772, %s89_s26 }
 0x124   :  { %s349_s6 = sadd.f32 135.45882, %s92_s2  ;;  %s177_s11 = smul.f32 %s268_s30, %s341_s21 }
 0x125   :  { %s118_s8 = sadd.f32 %s117_s25, %s347_s4  ;;  %s189_s13 = smul.f32 %s270_s3, %s341_s21 }
 0x126   :  { %s141_s10 = sadd.f32 %s140_s28, %s349_s6  ;;  %s202_s17 = smul.f32 %s272_s9, %s341_s21 }
 0x127   :  { %s355_s12 = sadd.f32 -226.816, %s94_s5 }
 0x128   :  { %s142_s14 = smin.f32 %s141_s10, %s118_s8  ;;  %s178_s15 = sadd.f32 %s177_s11, %s347_s4 }
 0x129   :  { %s165_s16 = sadd.f32 %s164_s7, %s355_s12 }
 0x12a   :  { %s190_s18 = sadd.f32 %s189_s13, %s349_s6 }
 0x12b   :  { %s166_s20 = smin.f32 %s165_s16, %s142_s14  ;;  %s203_s22 = sadd.f32 %s202_s17, %s355_s12 }
 0x12c   :  { %s191_s23 = smax.f32 %s190_s18, %s178_s15 }
 0x12d   :  { %s204_s24 = smax.f32 %s203_s22, %s191_s23 }
 0x12e   :  { %s205_s25 = ssub.f32 %s204_s24, %s166_s20 }
 0x130   :  { %v206_v54 = vstv %s205_s25 }
 0x131   :  { %278 = vrcp.f32 %v206_v54 }
 0x13e   :  { %v279_v55 = vpop.eup %278 }
 0x13f   :  { %273 = vpush %v279_v55 }
 0x170   :  { %s274_s26 = spop %273 }
 0x171   :  { %s209_s27 = smul.f32 %s274_s26, %s338_s19 }
 0x173   :  { %s210_s28 = smul.f32 %s209_s27, %s166_s20 }
 0x174   :  { %s212_s29 = smul.f32 %s209_s27, %s341_s21 }
 0x175   :  { %s211_s30 = ssub.f32 %s335_s0, %s210_s28  ;;  %s213_s2 = smul.f32 %s209_s27, %s347_s4 }
 0x176   :  { %s215_s3 = smul.f32 %s209_s27, %s349_s6  ;;  %v219_v56 = vstv %s212_s29 }
 0x177   :  { %s214_s5 = sadd.f32 %s213_s2, %s211_s30  ;;  %s217_s7 = smul.f32 %s209_s27, %s355_s12  ;;  %v220_v57 = vmul.f32 %v219_v56, %v309_v23  ;;  %v221_v58 = vmul.f32 %v219_v56, %v311_v24  ;;  %v227_v60 = vmul.f32 %v219_v56, %v321_v41  ;;  %v228_v61 = vmul.f32 %v219_v56, %v324_v43 }
 0x178   :  { %s216_s8 = sadd.f32 %s215_s3, %s211_s30  ;;  %v235_v62 = vmul.f32 %v219_v56, %v313_v29  ;;  %v236_v2 = vmul.f32 %v219_v56, %v317_v32 }
 0x179   :  { %s218_s9 = sadd.f32 %s217_s7, %s211_s30  ;;  %v222_v59 = vstv %s214_s5 }
 0x17a   :  { %v223_v63 = vadd.f32 %v222_v59, %v220_v57  ;;  %v224_v0 = vadd.f32 %v222_v59, %v221_v58  ;;  %v229_v1 = vstv %s216_s8 }
 0x17b   :  { %v230_v3 = vadd.f32 %v229_v1, %v227_v60  ;;  %v231_v4 = vadd.f32 %v229_v1, %v228_v61  ;;  %v237_v5 = vstv %s218_s9 }
 0x17c   :  { %225 = vst [vmem:[%s394_s1] sm:$0x3] %v223_v63  ;;  %226 = vst [vmem:[%s394_s1 + $0x6] sm:$0x3] %v224_v0  ;;  %v238_v23 = vadd.f32 %v237_v5, %v235_v62  ;;  %v239_v24 = vadd.f32 %v237_v5, %v236_v2 }
 0x17d   :  { %251 = vst [vmem:[%s394_s1 + $0x2] sm:$0x3] %v230_v3  ;;  %252 = vst [vmem:[%s394_s1 + $0x8] sm:$0x3] %v231_v4 }
 0x17e   :  { %253 = vst [vmem:[%s394_s1 + $0x4] sm:$0x3] %v238_v23  ;;  %254 = vst [vmem:[%s394_s1 + $0xa] sm:$0x3] %v239_v24 }

</bundles_post_ra>
